<compile_context>
chip_gen: v6e
topology: v6e:2x2x1
jax: 0.10.0
libtpu: 0.0.40
codegen_flags: <defaults>
</compile_context>

<pallas_src>
import functools

import jax
import jax.numpy as jnp
from jax import lax
from jax.experimental import pallas as pl
from jax.experimental.pallas import tpu as pltpu


# ------------------------------- helpers ------------------------------------

def _round_up(x, m):
    return ((x + m - 1) // m) * m


def _pick_chunk(T):
    for c in (16, 8, 4, 2, 1):
        if T % c == 0 and c <= T:
            return c
    return 1


def _row_tile(n):
    for cand in (512, 256, 128, 64, 32, 16, 8):
        if cand <= n and n % cand == 0:
            return cand
    return n


# --------------------- x-projection (gate_x) kernel --------------------------

def _proj_kernel(x_ref, w_ref, b_ref, o_ref):
    o_ref[...] = (jnp.dot(x_ref[...], w_ref[...],
                          preferred_element_type=jnp.float32) + b_ref[...])


def matmul_bias_pallas(x2d, w, b):
    """x2d: (N, F), w: (F, O), b: (1, O) -> (N, O). Row-tiled, parallel grid."""
    N, F = x2d.shape
    O = w.shape[1]
    TN = _row_tile(N)
    return pl.pallas_call(
        _proj_kernel,
        out_shape=jax.ShapeDtypeStruct((N, O), jnp.float32),
        grid=(N // TN,),
        in_specs=[
            pl.BlockSpec((TN, F), lambda i: (i, 0)),
            pl.BlockSpec((F, O), lambda i: (0, 0)),
            pl.BlockSpec((1, O), lambda i: (0, 0)),
        ],
        out_specs=pl.BlockSpec((TN, O), lambda i: (i, 0)),
        compiler_params=pltpu.CompilerParams(
            dimension_semantics=("parallel",)),
    )(x2d, w, b)


# --------------------------- recurrent kernel --------------------------------

def _bilstm_kernel(gx_f_ref, gx_b_ref, whh_ref,
                   hf_out_ref, hb_out_ref,
                   hcat_s, cf_s, cb_s, *, Hp, TC):
    i = pl.program_id(0)

    @pl.when(i == 0)
    def _():
        hcat_s[...] = jnp.zeros_like(hcat_s)
        cf_s[...] = jnp.zeros_like(cf_s)
        cb_s[...] = jnp.zeros_like(cb_s)

    Gp = 4 * Hp

    def cell(gates, c):
        # Gate order follows PyTorch: [i, f, g, o]; each slice is 128-lane
        # aligned because H was padded to Hp=128.
        ig = jax.nn.sigmoid(gates[:, 0 * Hp:1 * Hp])
        fg = jax.nn.sigmoid(gates[:, 1 * Hp:2 * Hp])
        gg = jnp.tanh(gates[:, 2 * Hp:3 * Hp])
        og = jax.nn.sigmoid(gates[:, 3 * Hp:4 * Hp])
        c_new = fg * c + ig * gg
        h_new = og * jnp.tanh(c_new)
        return h_new, c_new

    def body(k, carry):
        # One fused (Bp, 2Hp) x (2Hp, 8Hp) block-diagonal matmul covers both
        # directions' h @ Whh for this step.
        gates_h = jnp.dot(hcat_s[...], whh_ref[...],
                          preferred_element_type=jnp.float32)   # (Bp, 8Hp)
        g_f = gates_h[:, :Gp] + gx_f_ref[k]                     # fwd: time k
        g_b = gates_h[:, Gp:] + gx_b_ref[TC - 1 - k]            # bwd: reversed
        h_f, c_f = cell(g_f, cf_s[...])
        h_b, c_b = cell(g_b, cb_s[...])
        cf_s[...] = c_f
        cb_s[...] = c_b
        hcat_s[:, :Hp] = h_f
        hcat_s[:, Hp:] = h_b
        hf_out_ref[k] = h_f
        hb_out_ref[TC - 1 - k] = h_b
        return carry

    lax.fori_loop(0, TC, body, 0, unroll=True)


def bilstm_recurrence(gate_x, whh_big, Hp):
    """gate_x: (T, Bp, 8*Hp) = x@Wih^T + bias for both directions.
    whh_big: (2Hp, 8Hp) block-diagonal recurrent weights.
    Returns (h_fwd, h_bwd), each (T, Bp, Hp)."""
    T, Bp, _ = gate_x.shape
    Gp = 4 * Hp
    TC = _pick_chunk(T)
    nchunks = T // TC

    grid_spec = pltpu.PrefetchScalarGridSpec(
        num_scalar_prefetch=0,
        grid=(nchunks,),
        in_specs=[
            # forward half of gate_x, time chunk i
            pl.BlockSpec((TC, Bp, Gp), lambda i: (i, 0, 0)),
            # backward half of gate_x, time chunk nchunks-1-i
            pl.BlockSpec((TC, Bp, Gp), lambda i: (nchunks - 1 - i, 0, 1)),
            # recurrent weights (constant index map)
            pl.BlockSpec((2 * Hp, 2 * Gp), lambda i: (0, 0)),
        ],
        out_specs=[
            pl.BlockSpec((TC, Bp, Hp), lambda i: (i, 0, 0)),
            pl.BlockSpec((TC, Bp, Hp), lambda i: (nchunks - 1 - i, 0, 0)),
        ],
        scratch_shapes=[
            pltpu.VMEM((Bp, 2 * Hp), jnp.float32),   # [h_fwd | h_bwd] state
            pltpu.VMEM((Bp, Hp), jnp.float32),       # c_fwd state
            pltpu.VMEM((Bp, Hp), jnp.float32),       # c_bwd state
        ],
    )

    h_fwd, h_bwd = pl.pallas_call(
        functools.partial(_bilstm_kernel, Hp=Hp, TC=TC),
        out_shape=(jax.ShapeDtypeStruct((T, Bp, Hp), jnp.float32),
                   jax.ShapeDtypeStruct((T, Bp, Hp), jnp.float32)),
        grid_spec=grid_spec,
        compiler_params=pltpu.CompilerParams(
            dimension_semantics=("arbitrary",)),  # sequential recurrence
    )(gate_x, gate_x, whh_big)
    return h_fwd, h_bwd


# ------------------------ embedding (split Linear) ---------------------------

def _emb_kernel(hf_ref, hb_ref, wf_ref, wb_ref, b_ref, o_ref):
    acc = jnp.dot(hf_ref[...], wf_ref[...], preferred_element_type=jnp.float32)
    acc = acc + jnp.dot(hb_ref[...], wb_ref[...],
                        preferred_element_type=jnp.float32)
    o_ref[...] = acc + b_ref[...]


def embedding_pallas(hf2d, hb2d, wf, wb, b):
    """out = hf2d @ wf + hb2d @ wb + b, row-tiled (no 2H concatenate)."""
    N, Hp = hf2d.shape
    Op = wf.shape[1]
    TN = _row_tile(N)
    return pl.pallas_call(
        _emb_kernel,
        out_shape=jax.ShapeDtypeStruct((N, Op), jnp.float32),
        grid=(N // TN,),
        in_specs=[
            pl.BlockSpec((TN, Hp), lambda i: (i, 0)),
            pl.BlockSpec((TN, Hp), lambda i: (i, 0)),
            pl.BlockSpec((Hp, Op), lambda i: (0, 0)),
            pl.BlockSpec((Hp, Op), lambda i: (0, 0)),
            pl.BlockSpec((1, Op), lambda i: (0, 0)),
        ],
        out_specs=pl.BlockSpec((TN, Op), lambda i: (i, 0)),
        compiler_params=pltpu.CompilerParams(
            dimension_semantics=("parallel",)),
    )(hf2d, hb2d, wf, wb, b)


# ----------------------------- full module ----------------------------------

def bidirectional_lstm_forward(x, kp):
    """Equivalent of BidirectionalLSTM.forward. x: (T, B, nIn) -> (T, B, nOut)."""
    T, B, nIn = x.shape
    Hp, Op, nOut = kp["Hp"], kp["Op"], kp["nOut"]

    Bp = _round_up(B, 8)               # pad batch to fill vreg sublanes
    if Bp != B:
        x = jnp.pad(x, ((0, 0), (0, Bp - B), (0, 0)))

    # Hoisted input projection (both directions + fused biases), one matmul.
    x2d = x.reshape(T * Bp, nIn)
    gate_x = matmul_bias_pallas(x2d, kp["wih_big"], kp["bias_big"])
    gate_x = gate_x.reshape(T, Bp, 8 * Hp)

    # Sequential bidirectional recurrence.
    h_fwd, h_bwd = bilstm_recurrence(gate_x, kp["whh_big"], Hp)

    # Final Linear with split weights (no concat / HBM 2H intermediate).
    hf2d = h_fwd.reshape(T * Bp, Hp)
    hb2d = h_bwd.reshape(T * Bp, Hp)
    out2d = embedding_pallas(hf2d, hb2d, kp["emb_wf"], kp["emb_wb"],
                             kp["emb_b"])
    return out2d.reshape(T, Bp, Op)[:, :B, :nOut]


# --------------------- parameters (PyTorch layout + packing) -----------------

def init_params(key, nIn, H, nOut):
    """Raw parameters in PyTorch nn.LSTM / nn.Linear layout."""
    G = 4 * H
    k_lstm = 1.0 / jnp.sqrt(jnp.float32(H))
    k_lin = 1.0 / jnp.sqrt(jnp.float32(2 * H))
    keys = jax.random.split(key, 10)

    def u(k, shape, s):
        return jax.random.uniform(k, shape, jnp.float32, -s, s)

    return dict(
        wih_f=u(keys[0], (G, nIn), k_lstm), whh_f=u(keys[1], (G, H), k_lstm),
        bih_f=u(keys[2], (G,), k_lstm), bhh_f=u(keys[3], (G,), k_lstm),
        wih_b=u(keys[4], (G, nIn), k_lstm), whh_b=u(keys[5], (G, H), k_lstm),
        bih_b=u(keys[6], (G,), k_lstm), bhh_b=u(keys[7], (G,), k_lstm),
        emb_w=u(keys[8], (nOut, 2 * H), k_lin), emb_b=u(keys[9], (nOut,), k_lin),
    )


def pack_params(raw, nIn, H, nOut):
    """Pad H -> Hp=128*k, nOut -> Op=128*k, fuse biases, build the lane-aligned
    kernel-side weight layout.  Padded hidden units have all-zero weights and
    biases, so their state stays exactly 0 through the recurrence."""
    Hp = _round_up(H, 128)
    Op = _round_up(nOut, 128)
    Gp = 4 * Hp

    def pad_gate_cols(w_t, rows_out):
        # w_t: (rows_in, 4H) -> (rows_out, 4Hp), each gate block padded to Hp.
        rows_in = w_t.shape[0]
        out = jnp.zeros((rows_out, Gp), jnp.float32)
        for g in range(4):
            out = out.at[:rows_in, g * Hp:g * Hp + H].set(
                w_t[:, g * H:(g + 1) * H])
        return out

    def pad_bias(bih, bhh):
        s = bih + bhh
        out = jnp.zeros((1, Gp), jnp.float32)
        for g in range(4):
            out = out.at[0, g * Hp:g * Hp + H].set(s[g * H:(g + 1) * H])
        return out

    wih_f_p = pad_gate_cols(raw["wih_f"].T, nIn)   # (nIn, 4Hp)
    wih_b_p = pad_gate_cols(raw["wih_b"].T, nIn)
    whh_f_p = pad_gate_cols(raw["whh_f"].T, Hp)    # (Hp, 4Hp)
    whh_b_p = pad_gate_cols(raw["whh_b"].T, Hp)

    wih_big = jnp.concatenate([wih_f_p, wih_b_p], axis=1)          # (nIn, 8Hp)
    bias_big = jnp.concatenate([pad_bias(raw["bih_f"], raw["bhh_f"]),
                                pad_bias(raw["bih_b"], raw["bhh_b"])],
                               axis=1)                              # (1, 8Hp)

    # Block-diagonal recurrent weights: h_fwd only feeds forward gates,
    # h_bwd only feeds backward gates.
    whh_big = jnp.zeros((2 * Hp, 2 * Gp), jnp.float32)
    whh_big = whh_big.at[:Hp, :Gp].set(whh_f_p)
    whh_big = whh_big.at[Hp:, Gp:].set(whh_b_p)

    emb_w = raw["emb_w"]                                            # (nOut, 2H)
    emb_wf = jnp.zeros((Hp, Op), jnp.float32).at[:H, :nOut].set(emb_w[:, :H].T)
    emb_wb = jnp.zeros((Hp, Op), jnp.float32).at[:H, :nOut].set(emb_w[:, H:].T)
    emb_b = jnp.zeros((1, Op), jnp.float32).at[0, :nOut].set(raw["emb_b"])

    return dict(Hp=Hp, Op=Op, nOut=nOut,
                wih_big=wih_big, bias_big=bias_big, whh_big=whh_big,
                emb_wf=emb_wf, emb_wb=emb_wb, emb_b=emb_b)


# ------------------------------ JAX reference --------------------------------

def reference_forward(x, raw, H):
    """Pure-JAX reference in PyTorch layout (full-precision matmuls)."""
    T, B, _ = x.shape
    P = lax.Precision.HIGHEST

    def scan_dir(wih, whh, bih, bhh, reverse):
        wih_t, whh_t = wih.T, whh.T
        bias = (bih + bhh)[None, :]

        def step(carry, xt):
            h, c = carry
            gates = (jnp.dot(xt, wih_t, precision=P)
                     + jnp.dot(h, whh_t, precision=P) + bias)
            i = jax.nn.sigmoid(gates[:, :H])
            f = jax.nn.sigmoid(gates[:, H:2 * H])
            g = jnp.tanh(gates[:, 2 * H:3 * H])
            o = jax.nn.sigmoid(gates[:, 3 * H:])
            c = f * c + i * g
            h = o * jnp.tanh(c)
            return (h, c), h

        init = (jnp.zeros((B, H), jnp.float32), jnp.zeros((B, H), jnp.float32))
        _, hs = lax.scan(step, init, x, reverse=reverse)
        return hs

    hf = scan_dir(raw["wih_f"], raw["whh_f"], raw["bih_f"], raw["bhh_f"], False)
    hb = scan_dir(raw["wih_b"], raw["whh_b"], raw["bih_b"], raw["bhh_b"], True)
    rec = jnp.concatenate([hf, hb], axis=-1).reshape(T * B, 2 * H)
    out = jnp.dot(rec, raw["emb_w"].T, precision=P) + raw["emb_b"][None, :]
    return out.reshape(T, B, -1)


# ----------------------------------- main ------------------------------------

if __name__ == "__main__":
    T, B, nIn, nHidden, nOut = 8, 2, 4, 32, 16

    key = jax.random.PRNGKey(0)
    k_x, k_p = jax.random.split(key)
    x = jax.random.normal(k_x, (T, B, nIn), jnp.float32)
    raw = init_params(k_p, nIn, nHidden, nOut)
    kp = pack_params(raw, nIn, nHidden, nOut)

    out = jax.block_until_ready(bidirectional_lstm_forward(x, kp))
    assert out.shape == (T, B, nOut), out.shape

    ref = jax.block_until_ready(reference_forward(x, raw, nHidden))
    max_err = float(jnp.max(jnp.abs(out - ref)))
    assert jnp.allclose(out, ref, atol=1e-3, rtol=1e-3), max_err

    print("KERNEL_OK")
</pallas_src>

<mosaic_0001>
module attributes {stable_mosaic.version = 11 : i64} {
  func.func @_proj_kernel(%arg0: i32, %arg1: memref<64x4xf32, #tpu.memory_space<vmem>>, %arg2: memref<4x1024xf32, #tpu.memory_space<vmem>>, %arg3: memref<1x1024xf32, #tpu.memory_space<vmem>>, %arg4: memref<64x1024xf32, #tpu.memory_space<vmem>>) attributes {dimension_semantics = [#tpu.dimension_semantics<parallel>], iteration_bounds = array<i64: 1>, scalar_prefetch = 0 : i64, scratch_operands = 0 : i64, tpu.core_type = #tpu.core_type<tc>, window_params = [{transform_indices = @transform_0, window_bounds = array<i64: 64, 4>}, {pipeline_mode = #tpu.pipeline_mode<synchronous>, transform_indices = @transform_1, window_bounds = array<i64: 4, 1024>}, {pipeline_mode = #tpu.pipeline_mode<synchronous>, transform_indices = @transform_2, window_bounds = array<i64: 1, 1024>}, {transform_indices = @transform_3, window_bounds = array<i64: 64, 1024>}]} {
    %c0 = arith.constant 0 : index
    %c0_0 = arith.constant 0 : index
    %0 = vector.load %arg1[%c0, %c0_0] : memref<64x4xf32, #tpu.memory_space<vmem>>, vector<64x4xf32>
    %c0_1 = arith.constant 0 : index
    %c0_2 = arith.constant 0 : index
    %1 = vector.load %arg2[%c0_1, %c0_2] : memref<4x1024xf32, #tpu.memory_space<vmem>>, vector<4x1024xf32>
    %cst = arith.constant dense<0.000000e+00> : vector<64x1024xf32>
    %2 = tpu.matmul %0, %1, %cst {dimension_numbers = #tpu.dot_dimension_numbers<[1], [0], [0], [1], [0, 0, 1, 1], [], []>} : vector<64x4xf32>, vector<4x1024xf32>, vector<64x1024xf32> -> vector<64x1024xf32>
    %c0_3 = arith.constant 0 : index
    %c0_4 = arith.constant 0 : index
    %3 = vector.load %arg3[%c0_3, %c0_4] : memref<1x1024xf32, #tpu.memory_space<vmem>>, vector<1x1024xf32>
    %4 = vector.broadcast %3 : vector<1x1024xf32> to vector<64x1024xf32>
    %5 = arith.addf %2, %4 : vector<64x1024xf32>
    %c0_5 = arith.constant 0 : index
    %c0_6 = arith.constant 0 : index
    %6 = vector.load %arg4[%c0_5, %c0_6] : memref<64x1024xf32, #tpu.memory_space<vmem>>, vector<64x1024xf32>
    tpu.vector_store %arg4[%c0_5, %c0_6], %5 {strides = array<i32>} : memref<64x1024xf32, #tpu.memory_space<vmem>>, vector<64x1024xf32>,
    return
  }
  func.func @transform_0(%arg0: i32) -> (i32, i32) {
    %c0_i32 = arith.constant 0 : i32
    %c0_i32_0 = arith.constant 0 : i32
    return %arg0, %c0_i32 : i32, i32
  }
  func.func @transform_1(%arg0: i32) -> (i32, i32) {
    %c0_i32 = arith.constant 0 : i32
    %c0_i32_0 = arith.constant 0 : i32
    %c0_i32_1 = arith.constant 0 : i32
    return %c0_i32, %c0_i32_0 : i32, i32
  }
  func.func @transform_2(%arg0: i32) -> (i32, i32) {
    %c0_i32 = arith.constant 0 : i32
    %c0_i32_0 = arith.constant 0 : i32
    %c0_i32_1 = arith.constant 0 : i32
    return %c0_i32, %c0_i32_0 : i32, i32
  }
  func.func @transform_3(%arg0: i32) -> (i32, i32) {
    %c0_i32 = arith.constant 0 : i32
    %c0_i32_0 = arith.constant 0 : i32
    return %arg0, %c0_i32 : i32, i32
  }
}

</mosaic_0001>

<bundles_post_ra>
// kernel: tpu_custom_call.1
= control target key start
LH: loop header
LB: loop body
LE: loop exit
PB: predicated region body
PF: predicated region fallthrough
CT: control target
= control target key end

     0   :  { %vm102_vm0 = vcmask 1043456   ;;  %v721_v4 = vmov 0.0   ;;  %vm77_vm1 = vcmask 31744   ;;  %s959_s0 = inlined_call_operand.vmem [shape: f32[64,4], index: 0, kind: input, shape index: {}]   ;;  %s960_s1 = inlined_call_operand.vmem [shape: f32[4,1024], index: 1, kind: input, shape index: {}]   ;;  %s961_s2 = inlined_call_operand.vmem [shape: f32[1,1024], index: 2, kind: input, shape index: {}]   ;;  %s962_s3 = inlined_call_operand.hbm [shape: f32[64,1024], index: 3, kind: output, shape index: {}]  }
   0x1   :  { %v23_v0 = vld [vmem:[%s960_s1] sm:$0xff]  ;;  %v24_v1 = vld [vmem:[%s960_s1 + $0x8] sm:$0xff]  ;;  %183 = vmatprep.mubr.f32.mxu0 %v721_v4  ;;  %296 = vmatprep.mubr.f32.mxu1 %v721_v4  ;;  %v25_v5 = vld [vmem:[%s960_s1 + $0x10] sm:$0xff] }
   0x2   :  { %v73_v2 = vcombine.high %v23_v0, %v23_v0  ;;  %v74_v3 = vcombine.high %v24_v1, %v24_v1  ;;  %v26_v6 = vld [vmem:[%s960_s1 + $0x18] sm:$0xff]  ;;  %v15_v7 = vld [vmem:[%s959_s0] sm:$0xff]  ;;  %v75_v8 = vcombine.high %v25_v5, %v25_v5 }
   0x3   :  { %v76_v9 = vcombine.high %v26_v6, %v26_v6 }
   0x4   :  { %651 = vmatprep.subr.msk.mxu0 %vm102_vm0, %v73_v2  ;;  %661 = vmatprep.subr.msk.mxu1 %vm102_vm0, %v74_v3 }
   0x5   :  { %652 = vmatpush1.msk.msra.mxu0 %vm102_vm0, %v23_v0  ;;  %662 = vmatpush1.msk.msra.mxu1 %vm102_vm0, %v24_v1 }
   0x6   :  { %8 = vsyncpa [#allocation3], 0  ;;  %653 = vmatmul.mubr.msk.f32.vlgmr.msra.gmra.mxu0 %vm77_vm1, %v15_v7  ;;  %663 = vmatmul.mubr.msk.f32.vlgmr.msra.gmra.mxu1 %vm77_vm1, %v15_v7  ;;  %v16_v10 = vld [vmem:[%s959_s0 + $0x8] sm:$0xff]  ;;  %v17_v11 = vld [vmem:[%s959_s0 + $0x10] sm:$0xff]  ;;  %v29_v17 = vlaneseq }
   0x7   :  { %671 = vmatprep.subr.msk.mxu0 %vm102_vm0, %v75_v8  ;;  %681 = vmatprep.subr.msk.mxu1 %vm102_vm0, %v76_v9  ;;  %v18_v12 = vld [vmem:[%s959_s0 + $0x18] sm:$0xff]  ;;  %v19_v13 = vld [vmem:[%s959_s0 + $0x20] sm:$0xff]  ;;  %v20_v14 = vld [vmem:[%s959_s0 + $0x28] sm:$0xff] }
   0x8   :  { %672 = vmatpush1.msk.msra.mxu0 %vm102_vm0, %v25_v5  ;;  %682 = vmatpush1.msk.msra.mxu1 %vm102_vm0, %v26_v6  ;;  %v21_v15 = vld [vmem:[%s959_s0 + $0x30] sm:$0xff]  ;;  %v22_v16 = vld [vmem:[%s959_s0 + $0x38] sm:$0xff]  ;;  %v853_v18 = vshrl.u32 %v29_v17, 7  ;;  %v860_v21 = vld [vmem:[%s961_s2] sm:$0xff]  ;;  %s722_s2 = smov [#allocation2]  }
   0x9   :  { %189 = vmatprep.mubr.f32.mxu0 %v721_v4  ;;  %302 = vmatprep.mubr.f32.mxu1 %v721_v4  ;;  %s640_s9 = sshll.u32 %s722_s2, 4  ;;  %s641_s9 = int_to_ptr.vmem [resolvable:$true] %s640_s9 }
   0xa   :  { %654 = vmatmul.mubr.msk.f32.gmra.mxu0 %vm77_vm1, %v16_v10  ;;  %664 = vmatmul.mubr.msk.f32.gmra.mxu1 %vm77_vm1, %v16_v10  ;;  %v31_v19 = vsub.s32 0, %v853_v18  ;;  %v39_v20 = vsub.s32 2, %v853_v18  ;;  %v35_v22 = vsub.s32 1, %v853_v18  ;;  %v43_v23 = vsub.s32 3, %v853_v18  ;;  %s699_s10 = scalar_lea.vmem %s641_s9, 8192  ;;  %p704_p1 = scmp.lt.s32.totalorder %s641_s9, %s641_s9 }
   0xb   :  { %195 = vmatprep.mubr.f32.mxu0 %v721_v4  ;;  %308 = vmatprep.mubr.f32.mxu1 %v721_v4  ;;  %v55_v17 = vsub.s32 6, %v853_v18  ;;  %p700_p0 = scmp.ne.s32.totalorder %s641_s9, %s699_s10  ;;  %p705_p2 = scmp.lt.s32.totalorder %s699_s10, %s699_s10 }
   0xc   :  { %v865_v24 = vrot.slane %v860_v21, %v31_v19  ;;  %v868_v25 = vrot.slane %v860_v21, %v39_v20  ;;  %v871_v26 = vrot.slane %v860_v21, %v35_v22  ;;  %v874_v27 = vrot.slane %v860_v21, %v43_v23 }
   0xd   :  { %p706_p3 = por %p705_p2, %p704_p1 }
   0xe   :  { %655 = vmatmul.mubr.msk.f32.gmra.mxu0 %vm77_vm1, %v17_v11  ;;  %665 = vmatmul.mubr.msk.f32.gmra.mxu1 %vm77_vm1, %v17_v11 }
   0xf   :  { %201 = vmatprep.mubr.f32.mxu0 %v721_v4  ;;  %314 = vmatprep.mubr.f32.mxu1 %v721_v4  ;;  %p707_p4 = pnand %p706_p3, %p700_p0 }
  0x12   :  { %656 = vmatmul.mubr.msk.f32.gmra.mxu0 %vm77_vm1, %v18_v12  ;;  %666 = vmatmul.mubr.msk.f32.gmra.mxu1 %vm77_vm1, %v18_v12 }
  0x13   :  { %207 = vmatprep.mubr.f32.mxu0 %v721_v4  ;;  %320 = vmatprep.mubr.f32.mxu1 %v721_v4 }
  0x16   :  { %657 = vmatmul.mubr.msk.f32.gmra.mxu0 %vm77_vm1, %v19_v13  ;;  %667 = vmatmul.mubr.msk.f32.gmra.mxu1 %vm77_vm1, %v19_v13 }
  0x17   :  { %213 = vmatprep.mubr.f32.mxu0 %v721_v4  ;;  %326 = vmatprep.mubr.f32.mxu1 %v721_v4 }
  0x1a   :  { %658 = vmatmul.mubr.msk.f32.gmra.mxu0 %vm77_vm1, %v20_v14  ;;  %668 = vmatmul.mubr.msk.f32.gmra.mxu1 %vm77_vm1, %v20_v14 }
  0x1b   :  { %219 = vmatprep.mubr.f32.mxu0 %v721_v4  ;;  %332 = vmatprep.mubr.f32.mxu1 %v721_v4 }
  0x1e   :  { %659 = vmatmul.mubr.msk.f32.gmra.mxu0 %vm77_vm1, %v21_v15  ;;  %669 = vmatmul.mubr.msk.f32.gmra.mxu1 %vm77_vm1, %v21_v15 }
  0x1f   :  { %225 = vmatprep.mubr.f32.mxu0 %v721_v4  ;;  %338 = vmatprep.mubr.f32.mxu1 %v721_v4 }
  0x22   :  { %660 = vmatmul.mubr.msk.f32.gmra.mxu0 %vm77_vm1, %v22_v16  ;;  %670 = vmatmul.mubr.msk.f32.gmra.mxu1 %vm77_vm1, %v22_v16 }
  0x23   :  { %409 = vmatprep.mubr.f32.mxu0 %v721_v4  ;;  %522 = vmatprep.mubr.f32.mxu1 %v721_v4 }
  0x26   :  { %673 = vmatmul.mubr.msk.f32.vlgmr.msra.gmra.mxu0 %vm77_vm1, %v15_v7  ;;  %683 = vmatmul.mubr.msk.f32.vlgmr.msra.gmra.mxu1 %vm77_vm1, %v15_v7 }
  0x27   :  { %415 = vmatprep.mubr.f32.mxu0 %v721_v4  ;;  %528 = vmatprep.mubr.f32.mxu1 %v721_v4 }
  0x2a   :  { %674 = vmatmul.mubr.msk.f32.gmra.mxu0 %vm77_vm1, %v16_v10  ;;  %684 = vmatmul.mubr.msk.f32.gmra.mxu1 %vm77_vm1, %v16_v10 }
  0x2b   :  { %421 = vmatprep.mubr.f32.mxu0 %v721_v4  ;;  %534 = vmatprep.mubr.f32.mxu1 %v721_v4 }
  0x2e   :  { %675 = vmatmul.mubr.msk.f32.gmra.mxu0 %vm77_vm1, %v17_v11  ;;  %685 = vmatmul.mubr.msk.f32.gmra.mxu1 %vm77_vm1, %v17_v11 }
  0x2f   :  { %427 = vmatprep.mubr.f32.mxu0 %v721_v4  ;;  %540 = vmatprep.mubr.f32.mxu1 %v721_v4 }
  0x32   :  { %676 = vmatmul.mubr.msk.f32.gmra.mxu0 %vm77_vm1, %v18_v12  ;;  %686 = vmatmul.mubr.msk.f32.gmra.mxu1 %vm77_vm1, %v18_v12 }
  0x33   :  { %433 = vmatprep.mubr.f32.mxu0 %v721_v4  ;;  %546 = vmatprep.mubr.f32.mxu1 %v721_v4 }
  0x36   :  { %677 = vmatmul.mubr.msk.f32.gmra.mxu0 %vm77_vm1, %v19_v13  ;;  %687 = vmatmul.mubr.msk.f32.gmra.mxu1 %vm77_vm1, %v19_v13 }
  0x37   :  { %439 = vmatprep.mubr.f32.mxu0 %v721_v4  ;;  %552 = vmatprep.mubr.f32.mxu1 %v721_v4 }
  0x3a   :  { %678 = vmatmul.mubr.msk.f32.gmra.mxu0 %vm77_vm1, %v20_v14  ;;  %688 = vmatmul.mubr.msk.f32.gmra.mxu1 %vm77_vm1, %v20_v14 }
  0x3b   :  { %445 = vmatprep.mubr.f32.mxu0 %v721_v4  ;;  %558 = vmatprep.mubr.f32.mxu1 %v721_v4 }
  0x3e   :  { %679 = vmatmul.mubr.msk.f32.gmra.mxu0 %vm77_vm1, %v21_v15  ;;  %689 = vmatmul.mubr.msk.f32.gmra.mxu1 %vm77_vm1, %v21_v15 }
  0x3f   :  { %451 = vmatprep.mubr.f32.mxu0 %v721_v4  ;;  %564 = vmatprep.mubr.f32.mxu1 %v721_v4 }
  0x42   :  { %680 = vmatmul.mubr.msk.f32.gmra.mxu0 %vm77_vm1, %v22_v16  ;;  %690 = vmatmul.mubr.msk.f32.gmra.mxu1 %vm77_vm1, %v22_v16  ;;  %v47_v16 = vsub.s32 4, %v853_v18 }
  0xc6   :  { %v185_v28 = vpop.f32.mrf.mxu0  ;;  %v298_v29 = vpop.f32.mrf.mxu1 }
  0xc7   :  { %v186_v30 = vadd.f32 %v185_v28, %v865_v24  ;;  %v299_v31 = vadd.f32 %v298_v29, %v868_v25  ;;  %v51_v28 = vsub.s32 5, %v853_v18  ;;  %v59_v29 = vsub.s32 7, %v853_v18 }
  0xc8   :  { %v187_v32 = vpop.f32.mrf.mxu0  ;;  %v300_v33 = vpop.f32.mrf.mxu1 }
  0xc9   :  { %571 = vst [vmem:[#allocation2] sm:$0xff] %v186_v30  ;;  %573 = vst [vmem:[#allocation2 + $0x10] sm:$0xff] %v299_v31  ;;  %v188_v34 = vadd.f32 %v187_v32, %v871_v26  ;;  %v301_v35 = vadd.f32 %v300_v33, %v874_v27 }
  0xca   :  { %v191_v36 = vpop.f32.mrf.mxu0  ;;  %v304_v37 = vpop.f32.mrf.mxu1 }
  0xcb   :  { %572 = vst [vmem:[#allocation2 + $0x8] sm:$0xff] %v188_v34  ;;  %574 = vst [vmem:[#allocation2 + $0x18] sm:$0xff] %v301_v35  ;;  %v192_v38 = vadd.f32 %v191_v36, %v865_v24  ;;  %v305_v39 = vadd.f32 %v304_v37, %v868_v25  ;;  %v911_v34 = vrot.slane %v860_v21, %v47_v16 }
  0xcc   :  { %v193_v40 = vpop.f32.mrf.mxu0  ;;  %v306_v41 = vpop.f32.mrf.mxu1  ;;  %v914_v35 = vrot.slane %v860_v21, %v55_v17 }
  0xcd   :  { %579 = vst [vmem:[#allocation2 + $0x40] sm:$0xff] %v192_v38  ;;  %581 = vst [vmem:[#allocation2 + $0x50] sm:$0xff] %v305_v39  ;;  %v194_v42 = vadd.f32 %v193_v40, %v871_v26  ;;  %v307_v43 = vadd.f32 %v306_v41, %v874_v27  ;;  %v919_v39 = vrot.slane %v860_v21, %v51_v28 }
  0xce   :  { %v197_v44 = vpop.f32.mrf.mxu0  ;;  %v310_v45 = vpop.f32.mrf.mxu1 }
  0xcf   :  { %580 = vst [vmem:[#allocation2 + $0x48] sm:$0xff] %v194_v42  ;;  %582 = vst [vmem:[#allocation2 + $0x58] sm:$0xff] %v307_v43  ;;  %v198_v46 = vadd.f32 %v197_v44, %v865_v24  ;;  %v311_v47 = vadd.f32 %v310_v45, %v868_v25 }
  0xd0   :  { %v199_v48 = vpop.f32.mrf.mxu0  ;;  %v312_v49 = vpop.f32.mrf.mxu1 }
  0xd1   :  { %587 = vst [vmem:[#allocation2 + $0x80] sm:$0xff] %v198_v46  ;;  %589 = vst [vmem:[#allocation2 + $0x90] sm:$0xff] %v311_v47  ;;  %v200_v50 = vadd.f32 %v199_v48, %v871_v26  ;;  %v313_v51 = vadd.f32 %v312_v49, %v874_v27 }
  0xd2   :  { %v203_v52 = vpop.f32.mrf.mxu0  ;;  %v316_v53 = vpop.f32.mrf.mxu1 }
  0xd3   :  { %588 = vst [vmem:[#allocation2 + $0x88] sm:$0xff] %v200_v50  ;;  %590 = vst [vmem:[#allocation2 + $0x98] sm:$0xff] %v313_v51  ;;  %v204_v54 = vadd.f32 %v203_v52, %v865_v24  ;;  %v317_v55 = vadd.f32 %v316_v53, %v868_v25 }
  0xd4   :  { %v205_v56 = vpop.f32.mrf.mxu0  ;;  %v318_v57 = vpop.f32.mrf.mxu1 }
  0xd5   :  { %595 = vst [vmem:[#allocation2 + $0xc0] sm:$0xff] %v204_v54  ;;  %597 = vst [vmem:[#allocation2 + $0xd0] sm:$0xff] %v317_v55  ;;  %v206_v58 = vadd.f32 %v205_v56, %v871_v26  ;;  %v319_v59 = vadd.f32 %v318_v57, %v874_v27 }
  0xd6   :  { %v209_v60 = vpop.f32.mrf.mxu0  ;;  %v322_v61 = vpop.f32.mrf.mxu1 }
  0xd7   :  { %596 = vst [vmem:[#allocation2 + $0xc8] sm:$0xff] %v206_v58  ;;  %598 = vst [vmem:[#allocation2 + $0xd8] sm:$0xff] %v319_v59  ;;  %v210_v62 = vadd.f32 %v209_v60, %v865_v24  ;;  %v323_v63 = vadd.f32 %v322_v61, %v868_v25 }
  0xd8   :  { %v211_v0 = vpop.f32.mrf.mxu0  ;;  %v324_v1 = vpop.f32.mrf.mxu1 }
  0xd9   :  { %603 = vst [vmem:[#allocation2 + $0x100] sm:$0xff] %v210_v62  ;;  %605 = vst [vmem:[#allocation2 + $0x110] sm:$0xff] %v323_v63  ;;  %v212_v2 = vadd.f32 %v211_v0, %v871_v26  ;;  %v325_v3 = vadd.f32 %v324_v1, %v874_v27 }
  0xda   :  { %v215_v4 = vpop.f32.mrf.mxu0  ;;  %v328_v5 = vpop.f32.mrf.mxu1 }
  0xdb   :  { %604 = vst [vmem:[#allocation2 + $0x108] sm:$0xff] %v212_v2  ;;  %606 = vst [vmem:[#allocation2 + $0x118] sm:$0xff] %v325_v3  ;;  %v216_v6 = vadd.f32 %v215_v4, %v865_v24  ;;  %v329_v7 = vadd.f32 %v328_v5, %v868_v25 }
  0xdc   :  { %v217_v8 = vpop.f32.mrf.mxu0  ;;  %v330_v9 = vpop.f32.mrf.mxu1 }
  0xdd   :  { %611 = vst [vmem:[#allocation2 + $0x140] sm:$0xff] %v216_v6  ;;  %613 = vst [vmem:[#allocation2 + $0x150] sm:$0xff] %v329_v7  ;;  %v218_v10 = vadd.f32 %v217_v8, %v871_v26  ;;  %v331_v11 = vadd.f32 %v330_v9, %v874_v27 }
  0xde   :  { %v221_v12 = vpop.f32.mrf.mxu0  ;;  %v334_v13 = vpop.f32.mrf.mxu1 }
  0xdf   :  { %612 = vst [vmem:[#allocation2 + $0x148] sm:$0xff] %v218_v10  ;;  %614 = vst [vmem:[#allocation2 + $0x158] sm:$0xff] %v331_v11  ;;  %v222_v14 = vadd.f32 %v221_v12, %v865_v24  ;;  %v335_v15 = vadd.f32 %v334_v13, %v868_v25 }
  0xe0   :  { %v223_v19 = vpop.f32.mrf.mxu0  ;;  %v336_v20 = vpop.f32.mrf.mxu1 }
  0xe1   :  { %619 = vst [vmem:[#allocation2 + $0x180] sm:$0xff] %v222_v14  ;;  %621 = vst [vmem:[#allocation2 + $0x190] sm:$0xff] %v335_v15  ;;  %v224_v22 = vadd.f32 %v223_v19, %v871_v26  ;;  %v337_v23 = vadd.f32 %v336_v20, %v874_v27 }
  0xe2   :  { %v227_v30 = vpop.f32.mrf.mxu0  ;;  %v340_v31 = vpop.f32.mrf.mxu1 }
  0xe3   :  { %620 = vst [vmem:[#allocation2 + $0x188] sm:$0xff] %v224_v22  ;;  %622 = vst [vmem:[#allocation2 + $0x198] sm:$0xff] %v337_v23  ;;  %v228_v32 = vadd.f32 %v227_v30, %v865_v24  ;;  %v341_v33 = vadd.f32 %v340_v31, %v868_v25  ;;  %v922_v24 = vrot.slane %v860_v21, %v59_v29 }
  0xe4   :  { %v229_v36 = vpop.f32.mrf.mxu0  ;;  %v342_v37 = vpop.f32.mrf.mxu1 }
  0xe5   :  { %627 = vst [vmem:[#allocation2 + $0x1c0] sm:$0xff] %v228_v32  ;;  %629 = vst [vmem:[#allocation2 + $0x1d0] sm:$0xff] %v341_v33  ;;  %v230_v18 = vadd.f32 %v229_v36, %v871_v26  ;;  %v343_v38 = vadd.f32 %v342_v37, %v874_v27 }
  0xe6   :  { %v411_v25 = vpop.f32.mrf.mxu0  ;;  %v524_v40 = vpop.f32.mrf.mxu1 }
  0xe7   :  { %628 = vst [vmem:[#allocation2 + $0x1c8] sm:$0xff] %v230_v18  ;;  %630 = vst [vmem:[#allocation2 + $0x1d8] sm:$0xff] %v343_v38  ;;  %v412_v41 = vadd.f32 %v411_v25, %v911_v34  ;;  %v525_v42 = vadd.f32 %v524_v40, %v914_v35 }
  0xe8   :  { %v413_v43 = vpop.f32.mrf.mxu0  ;;  %v526_v44 = vpop.f32.mrf.mxu1 }
  0xe9   :  { %575 = vst [vmem:[#allocation2 + $0x20] sm:$0xff] %v412_v41  ;;  %577 = vst [vmem:[#allocation2 + $0x30] sm:$0xff] %v525_v42  ;;  %v414_v26 = vadd.f32 %v413_v43, %v919_v39  ;;  %v527_v27 = vadd.f32 %v526_v44, %v922_v24 }
  0xea   :  { %v417_v45 = vpop.f32.mrf.mxu0  ;;  %v530_v46 = vpop.f32.mrf.mxu1 }
  0xeb   :  { %576 = vst [vmem:[#allocation2 + $0x28] sm:$0xff] %v414_v26  ;;  %578 = vst [vmem:[#allocation2 + $0x38] sm:$0xff] %v527_v27  ;;  %v418_v21 = vadd.f32 %v417_v45, %v911_v34  ;;  %v531_v47 = vadd.f32 %v530_v46, %v914_v35 }
  0xec   :  { %v419_v48 = vpop.f32.mrf.mxu0  ;;  %v532_v49 = vpop.f32.mrf.mxu1 }
  0xed   :  { %583 = vst [vmem:[#allocation2 + $0x60] sm:$0xff] %v418_v21  ;;  %585 = vst [vmem:[#allocation2 + $0x70] sm:$0xff] %v531_v47  ;;  %v420_v50 = vadd.f32 %v419_v48, %v919_v39  ;;  %v533_v51 = vadd.f32 %v532_v49, %v922_v24 }
  0xee   :  { %v423_v52 = vpop.f32.mrf.mxu0  ;;  %v536_v53 = vpop.f32.mrf.mxu1 }
  0xef   :  { %584 = vst [vmem:[#allocation2 + $0x68] sm:$0xff] %v420_v50  ;;  %586 = vst [vmem:[#allocation2 + $0x78] sm:$0xff] %v533_v51  ;;  %v424_v54 = vadd.f32 %v423_v52, %v911_v34  ;;  %v537_v55 = vadd.f32 %v536_v53, %v914_v35 }
  0xf0   :  { %v425_v56 = vpop.f32.mrf.mxu0  ;;  %v538_v57 = vpop.f32.mrf.mxu1 }
  0xf1   :  { %591 = vst [vmem:[#allocation2 + $0xa0] sm:$0xff] %v424_v54  ;;  %593 = vst [vmem:[#allocation2 + $0xb0] sm:$0xff] %v537_v55  ;;  %v426_v58 = vadd.f32 %v425_v56, %v919_v39  ;;  %v539_v59 = vadd.f32 %v538_v57, %v922_v24 }
  0xf2   :  { %v429_v60 = vpop.f32.mrf.mxu0  ;;  %v542_v61 = vpop.f32.mrf.mxu1 }
  0xf3   :  { %592 = vst [vmem:[#allocation2 + $0xa8] sm:$0xff] %v426_v58  ;;  %594 = vst [vmem:[#allocation2 + $0xb8] sm:$0xff] %v539_v59  ;;  %v430_v62 = vadd.f32 %v429_v60, %v911_v34  ;;  %v543_v63 = vadd.f32 %v542_v61, %v914_v35 }
  0xf4   :  { %v431_v0 = vpop.f32.mrf.mxu0  ;;  %v544_v1 = vpop.f32.mrf.mxu1 }
  0xf5   :  { %599 = vst [vmem:[#allocation2 + $0xe0] sm:$0xff] %v430_v62  ;;  %601 = vst [vmem:[#allocation2 + $0xf0] sm:$0xff] %v543_v63  ;;  %v432_v2 = vadd.f32 %v431_v0, %v919_v39  ;;  %v545_v3 = vadd.f32 %v544_v1, %v922_v24 }
  0xf6   :  { %v435_v4 = vpop.f32.mrf.mxu0  ;;  %v548_v5 = vpop.f32.mrf.mxu1 }
  0xf7   :  { %600 = vst [vmem:[#allocation2 + $0xe8] sm:$0xff] %v432_v2  ;;  %602 = vst [vmem:[#allocation2 + $0xf8] sm:$0xff] %v545_v3  ;;  %v436_v6 = vadd.f32 %v435_v4, %v911_v34  ;;  %v549_v7 = vadd.f32 %v548_v5, %v914_v35 }
  0xf8   :  { %v437_v8 = vpop.f32.mrf.mxu0  ;;  %v550_v9 = vpop.f32.mrf.mxu1 }
  0xf9   :  { %607 = vst [vmem:[#allocation2 + $0x120] sm:$0xff] %v436_v6  ;;  %609 = vst [vmem:[#allocation2 + $0x130] sm:$0xff] %v549_v7  ;;  %v438_v10 = vadd.f32 %v437_v8, %v919_v39  ;;  %v551_v11 = vadd.f32 %v550_v9, %v922_v24 }
  0xfa   :  { %v441_v12 = vpop.f32.mrf.mxu0  ;;  %v554_v13 = vpop.f32.mrf.mxu1 }
  0xfb   :  { %608 = vst [vmem:[#allocation2 + $0x128] sm:$0xff] %v438_v10  ;;  %610 = vst [vmem:[#allocation2 + $0x138] sm:$0xff] %v551_v11  ;;  %v442_v14 = vadd.f32 %v441_v12, %v911_v34  ;;  %v555_v15 = vadd.f32 %v554_v13, %v914_v35 }
  0xfc   :  { %v443_v16 = vpop.f32.mrf.mxu0  ;;  %v556_v17 = vpop.f32.mrf.mxu1 }
  0xfd   :  { %615 = vst [vmem:[#allocation2 + $0x160] sm:$0xff] %v442_v14  ;;  %617 = vst [vmem:[#allocation2 + $0x170] sm:$0xff] %v555_v15  ;;  %v444_v19 = vadd.f32 %v443_v16, %v919_v39  ;;  %v557_v20 = vadd.f32 %v556_v17, %v922_v24 }
  0xfe   :  { %v447_v22 = vpop.f32.mrf.mxu0  ;;  %v560_v23 = vpop.f32.mrf.mxu1 }
  0xff   :  { %616 = vst [vmem:[#allocation2 + $0x168] sm:$0xff] %v444_v19  ;;  %618 = vst [vmem:[#allocation2 + $0x178] sm:$0xff] %v557_v20  ;;  %v448_v28 = vadd.f32 %v447_v22, %v911_v34  ;;  %v561_v29 = vadd.f32 %v560_v23, %v914_v35 }
 0x100   :  { %v449_v30 = vpop.f32.mrf.mxu0  ;;  %v562_v31 = vpop.f32.mrf.mxu1 }
 0x101   :  { %623 = vst [vmem:[#allocation2 + $0x1a0] sm:$0xff] %v448_v28  ;;  %625 = vst [vmem:[#allocation2 + $0x1b0] sm:$0xff] %v561_v29  ;;  %v450_v32 = vadd.f32 %v449_v30, %v919_v39  ;;  %v563_v33 = vadd.f32 %v562_v31, %v922_v24 }
 0x102   :  { %v453_v36 = vpop.f32.mrf.mxu0  ;;  %v566_v37 = vpop.f32.mrf.mxu1 }
 0x103   :  { %624 = vst [vmem:[#allocation2 + $0x1a8] sm:$0xff] %v450_v32  ;;  %626 = vst [vmem:[#allocation2 + $0x1b8] sm:$0xff] %v563_v33  ;;  %v454_v18 = vadd.f32 %v453_v36, %v911_v34  ;;  %v567_v38 = vadd.f32 %v566_v37, %v914_v35 }
 0x104   :  { %v455_v25 = vpop.f32.mrf.mxu0  ;;  %v568_v40 = vpop.f32.mrf.mxu1 }
 0x105   :  { %631 = vst [vmem:[#allocation2 + $0x1e0] sm:$0xff] %v454_v18  ;;  %633 = vst [vmem:[#allocation2 + $0x1f0] sm:$0xff] %v567_v38  ;;  %v456_v41 = vadd.f32 %v455_v25, %v919_v39  ;;  %v569_v42 = vadd.f32 %v568_v40, %v922_v24 }
 0x107   :  { %632 = vst [vmem:[#allocation2 + $0x1e8] sm:$0xff] %v456_v41  ;;  %634 = vst [vmem:[#allocation2 + $0x1f8] sm:$0xff] %v569_v42 }
 0x108   :  { %710 = shalt.err (!%p707_p4)
}
 0x109   :  { %s723_s11 = smov 1024   ;;  %s724_s12 = smov 64  }
 0x10a   :  { %646 = dma.vmem_to_hbm [thread:$0]  %s641_s9, 8192, %s962_s3, [#allocation3], %s723_s11, %s723_s11, %s724_s12  }
 0x10b   :  { %719 = dma.done.wait [#allocation3], 8192  }
 0x10c   :  { %720 = vsyncadd [#allocation3], 4294959104 }
 0x10d   :  { %650 = vsyncpa [#allocation3], 1 }

</bundles_post_ra>
